<compile_context>
chip_gen: v6e
topology: v6e:2x2x1
jax: 0.10.0
libtpu: 0.0.40
codegen_flags: <defaults>
</compile_context>

<pallas_src>
import numpy as np

import jax
import jax.numpy as jnp
from jax.experimental import pallas as pl
from jax.experimental.pallas import tpu as pltpu


# ----------------------------------------------------------------------------
# Host-side constants (numpy -> compile-time constants)
# ----------------------------------------------------------------------------
def _linear_upsample_matrix_np(n_in: int) -> np.ndarray:
    """(2*n_in, n_in) 1-D linear interpolation matrix matching PyTorch
    nn.Upsample(scale_factor=2, mode='bilinear', align_corners=False)."""
    n_out = 2 * n_in
    r = np.arange(n_out, dtype=np.float64)
    src = np.maximum(r * 0.5 - 0.25, 0.0)          # half-pixel centers, clamped
    i0 = np.floor(src).astype(np.int64)
    lam = src - i0
    i1 = np.minimum(i0 + 1, n_in - 1)
    U = np.zeros((n_out, n_in), dtype=np.float64)
    np.add.at(U, (np.arange(n_out), i0), 1.0 - lam)
    np.add.at(U, (np.arange(n_out), i1), lam)
    return U


# ----------------------------------------------------------------------------
# Pallas kernel (closure over static shapes)
# ----------------------------------------------------------------------------
def _make_kernel(bt: int, h: int, w: int, cout: int):
    def kernel(x_ref, w_ref, b_ref, uwt_ref, uh_ref, o_ref):
        # x_ref  : (bt, H, Cin, W)   bf16   NHCW layout (W on lanes)
        # w_ref  : (Cout, Cin)       bf16   conv1x1 weight, BN scale folded in
        # b_ref  : (Cout, 1)         f32    folded conv + BN bias
        # uwt_ref: (W, 2W)           bf16   width-pass interpolation (Uw^T)
        # uh_ref : (2H, H)           bf16   height-pass interpolation (Uh)
        # o_ref  : (bt, Cout, 2H, 2W)
        wmat = w_ref[...]                                   # (Cout, Cin)
        bias = b_ref[...]                                   # (Cout, 1) f32
        uwt = uwt_ref[...]                                  # (W, 2W)
        uh = uh_ref[...]                                    # (2H, H)
        cin = wmat.shape[1]
        # Hoisted, loop-invariant broadcast (JAX does not CSE broadcasts).
        wb = jnp.broadcast_to(wmat[None], (h, cout, cin))   # (H, Cout, Cin)

        for bi in range(bt):
            x3 = x_ref[bi]                                  # (H, Cin, W) bf16
            # 1x1 conv (+ folded BN), batched over H on the MXU, f32 accum.
            y = jax.lax.dot_general(
                wb, x3,
                dimension_numbers=(((2,), (1,)), ((0,), (0,))),
                preferred_element_type=jnp.float32)         # (H, Cout, W) f32
            y = jnp.maximum(y + bias[None, :, :], 0.0)      # bias + ReLU
            # Width pass: one matmul on the merged (H*Cout, W) view.
            y2 = y.astype(jnp.bfloat16).reshape(h * cout, w)
            yw = jnp.dot(y2, uwt,
                         preferred_element_type=jnp.float32)        # (H*Cout, 2W)
            yw3 = yw.astype(jnp.bfloat16).reshape(h, cout, 2 * w)   # (H, Cout, 2W)
            # Height pass: per-channel (2H, H) @ (H, 2W) matmuls (static unroll,
            # small Cout here -- see TODO for channel-chunked grids).
            for c in range(cout):
                o_ref[bi, c] = jnp.dot(
                    uh, yw3[:, c, :],
                    preferred_element_type=jnp.float32).astype(o_ref.dtype)

    return kernel


# ----------------------------------------------------------------------------
# Wrapper
# ----------------------------------------------------------------------------
def upsample_forward(x_nchw, params, *, batch_tile: int = 1,
                     out_dtype=jnp.float32):
    B, Cin, H, W = x_nchw.shape
    Cout = params["conv_w"].shape[0]
    assert B % batch_tile == 0, "batch must be divisible by batch_tile"
    nb = B // batch_tile

    # Fold eval-mode BatchNorm into the 1x1 conv.
    scale = params["bn_gamma"] * jax.lax.rsqrt(params["bn_var"] + params["bn_eps"])
    w_f = (scale[:, None] * params["conv_w"]).astype(jnp.bfloat16)       # (Cout, Cin)
    b_f = (scale * (params["conv_b"] - params["bn_mean"])
           + params["bn_beta"]).astype(jnp.float32)[:, None]             # (Cout, 1)

    # Separable bilinear 2x interpolation matrices (bf16-exact entries).
    uh = jnp.asarray(_linear_upsample_matrix_np(H), dtype=jnp.bfloat16)      # (2H, H)
    uwt = jnp.asarray(_linear_upsample_matrix_np(W).T, dtype=jnp.bfloat16)   # (W, 2W)

    # NHCW layout (W on lanes for the spatial passes); bf16 halves the HBM read.
    x_nhcw = jnp.transpose(x_nchw, (0, 2, 1, 3)).astype(jnp.bfloat16)    # (B, H, Cin, W)

    kernel = _make_kernel(batch_tile, H, W, Cout)

    out = pl.pallas_call(
        kernel,
        grid=(nb,),
        in_specs=[
            pl.BlockSpec((batch_tile, H, Cin, W), lambda b: (b, 0, 0, 0)),
            pl.BlockSpec((Cout, Cin), lambda b: (0, 0)),
            pl.BlockSpec((Cout, 1), lambda b: (0, 0)),
            pl.BlockSpec((W, 2 * W), lambda b: (0, 0)),
            pl.BlockSpec((2 * H, H), lambda b: (0, 0)),
        ],
        out_specs=pl.BlockSpec((batch_tile, Cout, 2 * H, 2 * W),
                               lambda b: (b, 0, 0, 0)),
        out_shape=jax.ShapeDtypeStruct((B, Cout, 2 * H, 2 * W), out_dtype),
        compiler_params=pltpu.CompilerParams(
            dimension_semantics=("parallel",),
            # Under v7x's 64 MiB physical VMEM, above the 32 MiB scoped default.
            vmem_limit_bytes=48 * 1024 * 1024,
        ),
    )(x_nhcw, w_f, b_f, uwt, uh)
    return out


# ----------------------------------------------------------------------------
# Deterministic parameter init
# ----------------------------------------------------------------------------
def init_params(key, Cin, Cout):
    ks = jax.random.split(key, 6)

    def n(k, shape, s):
        return (s * jax.random.normal(k, shape)).astype(jnp.float32)

    return dict(
        conv_w=n(ks[0], (Cout, Cin), 0.3),
        conv_b=n(ks[1], (Cout,), 0.1),
        bn_gamma=(1.0 + n(ks[2], (Cout,), 0.1)),
        bn_beta=n(ks[3], (Cout,), 0.1),
        bn_mean=n(ks[4], (Cout,), 0.1),
        bn_var=(0.5 + jnp.abs(n(ks[5], (Cout,), 0.3))),
        bn_eps=1e-5,
    )


# ----------------------------------------------------------------------------
# Pure-JAX reference (independent gather-based bilinear, PyTorch semantics)
# ----------------------------------------------------------------------------
def _bilinear_upsample_ref(x):            # (B, C, H, W) -> (B, C, 2H, 2W)
    B, C, H, W = x.shape

    def idx(n):
        r = jnp.arange(2 * n, dtype=jnp.float32)
        src = jnp.maximum(r * 0.5 - 0.25, 0.0)
        i0 = jnp.floor(src).astype(jnp.int32)
        lam = src - i0.astype(jnp.float32)
        i1 = jnp.minimum(i0 + 1, n - 1)
        return i0, i1, lam

    h0, h1, lh = idx(H)
    w0, w1, lw = idx(W)
    rows = (x[:, :, h0, :] * (1.0 - lh)[None, None, :, None]
            + x[:, :, h1, :] * lh[None, None, :, None])            # (B,C,2H,W)
    out = (rows[:, :, :, w0] * (1.0 - lw)
           + rows[:, :, :, w1] * lw)                               # (B,C,2H,2W)
    return out


def upsample_reference(x_nchw, params):
    y = jnp.einsum("oi,bihw->bohw", params["conv_w"], x_nchw,
                   precision="highest") + params["conv_b"][None, :, None, None]
    scale = params["bn_gamma"] / jnp.sqrt(params["bn_var"] + params["bn_eps"])
    y = ((y - params["bn_mean"][None, :, None, None])
         * scale[None, :, None, None]
         + params["bn_beta"][None, :, None, None])
    y = jnp.maximum(y, 0.0)
    return _bilinear_upsample_ref(y)


# ----------------------------------------------------------------------------
if __name__ == "__main__":
    key = jax.random.PRNGKey(0)
    B, Cin, Cout, H, W = 2, 4, 8, 16, 16
    k_x, k_p = jax.random.split(key)

    x = jax.random.normal(k_x, (B, Cin, H, W), dtype=jnp.float32)
    params = init_params(k_p, Cin, Cout)

    out = jax.block_until_ready(upsample_forward(x, params))
    assert out.shape == (B, Cout, 2 * H, 2 * W)

    ref = jax.block_until_ready(upsample_reference(x, params))
    err = float(jnp.max(jnp.abs(out - ref)))
    ref_max = float(jnp.max(jnp.abs(ref)))
    # bf16 MXU operands -> scale-aware (relative ~2e-2) tolerance.
    if err > 2e-2 * (1.0 + ref_max):
        raise AssertionError(
            f"Pallas kernel mismatch vs reference: abs_err={err}, ref_max={ref_max}")

    print("KERNEL_OK")
</pallas_src>

<mosaic_0001>
module attributes {stable_mosaic.version = 11 : i64} {
  func.func @kernel(%arg0: i32, %arg1: memref<1x16x4x16xbf16, #tpu.memory_space<vmem>>, %arg2: memref<8x4xbf16, #tpu.memory_space<vmem>>, %arg3: memref<8x1xf32, #tpu.memory_space<vmem>>, %arg4: memref<16x32xbf16, #tpu.memory_space<vmem>>, %arg5: memref<32x16xbf16, #tpu.memory_space<vmem>>, %arg6: memref<1x8x32x32xf32, #tpu.memory_space<vmem>>) attributes {dimension_semantics = [#tpu.dimension_semantics<parallel>], iteration_bounds = array<i64: 2>, scalar_prefetch = 0 : i64, scratch_operands = 0 : i64, tpu.core_type = #tpu.core_type<tc>, window_params = [{transform_indices = @transform_0, window_bounds = array<i64: 1, 16, 4, 16>}, {pipeline_mode = #tpu.pipeline_mode<synchronous>, transform_indices = @transform_1, window_bounds = array<i64: 8, 4>}, {pipeline_mode = #tpu.pipeline_mode<synchronous>, transform_indices = @transform_2, window_bounds = array<i64: 8, 1>}, {pipeline_mode = #tpu.pipeline_mode<synchronous>, transform_indices = @transform_3, window_bounds = array<i64: 16, 32>}, {pipeline_mode = #tpu.pipeline_mode<synchronous>, transform_indices = @transform_4, window_bounds = array<i64: 32, 16>}, {transform_indices = @transform_5, window_bounds = array<i64: 1, 8, 32, 32>}]} {
    %c0 = arith.constant 0 : index
    %c0_0 = arith.constant 0 : index
    %0 = vector.load %arg2[%c0, %c0_0] : memref<8x4xbf16, #tpu.memory_space<vmem>>, vector<8x4xbf16>
    %c0_1 = arith.constant 0 : index
    %c0_2 = arith.constant 0 : index
    %1 = vector.load %arg3[%c0_1, %c0_2] : memref<8x1xf32, #tpu.memory_space<vmem>>, vector<8x1xf32>
    %c0_3 = arith.constant 0 : index
    %c0_4 = arith.constant 0 : index
    %2 = vector.load %arg4[%c0_3, %c0_4] : memref<16x32xbf16, #tpu.memory_space<vmem>>, vector<16x32xbf16>
    %c0_5 = arith.constant 0 : index
    %c0_6 = arith.constant 0 : index
    %3 = vector.load %arg5[%c0_5, %c0_6] : memref<32x16xbf16, #tpu.memory_space<vmem>>, vector<32x16xbf16>
    %4 = vector.shape_cast %0 : vector<8x4xbf16> to vector<1x8x4xbf16>
    %5 = vector.shape_cast %4 : vector<1x8x4xbf16> to vector<1x8x4xbf16>
    %6 = vector.broadcast %5 : vector<1x8x4xbf16> to vector<16x8x4xbf16>
    %c0_7 = arith.constant 0 : index
    %c0_8 = arith.constant 0 : index
    %c0_9 = arith.constant 0 : index
    %c0_10 = arith.constant 0 : index
    %7 = vector.load %arg1[%c0_7, %c0_8, %c0_9, %c0_10] : memref<1x16x4x16xbf16, #tpu.memory_space<vmem>>, vector<1x16x4x16xbf16>
    %8 = vector.shape_cast %7 : vector<1x16x4x16xbf16> to vector<16x4x16xbf16>
    %cst = arith.constant dense<0.000000e+00> : vector<16x8x16xf32>
    %9 = tpu.matmul %6, %8, %cst {dimension_numbers = #tpu.dot_dimension_numbers<[2], [1], [1], [2], [0, 0, 0, 1, 1, 2], [0], [0]>} : vector<16x8x4xbf16>, vector<16x4x16xbf16>, vector<16x8x16xf32> -> vector<16x8x16xf32>
    %10 = vector.shape_cast %1 : vector<8x1xf32> to vector<1x8x1xf32>
    %11 = vector.broadcast %10 : vector<1x8x1xf32> to vector<16x8x16xf32>
    %12 = arith.addf %9, %11 : vector<16x8x16xf32>
    %cst_11 = arith.constant 0.000000e+00 : f32
    %13 = vector.broadcast %cst_11 : f32 to vector<16x8x16xf32>
    %14 = arith.maximumf %12, %13 : vector<16x8x16xf32>
    %15 = arith.truncf %14 : vector<16x8x16xf32> to vector<16x8x16xbf16>
    %16 = vector.shape_cast %15 : vector<16x8x16xbf16> to vector<128x16xbf16>
    %cst_12 = arith.constant dense<0.000000e+00> : vector<128x32xf32>
    %17 = tpu.matmul %16, %2, %cst_12 {dimension_numbers = #tpu.dot_dimension_numbers<[1], [0], [0], [1], [0, 0, 1, 1], [], []>} : vector<128x16xbf16>, vector<16x32xbf16>, vector<128x32xf32> -> vector<128x32xf32>
    %18 = arith.truncf %17 : vector<128x32xf32> to vector<128x32xbf16>
    %19 = vector.shape_cast %18 : vector<128x32xbf16> to vector<16x8x32xbf16>
    %20 = vector.extract_strided_slice %19 {offsets = [0, 0, 0], sizes = [16, 1, 32], strides = [1, 1, 1]} : vector<16x8x32xbf16> to vector<16x1x32xbf16>
    %21 = vector.shape_cast %20 : vector<16x1x32xbf16> to vector<16x32xbf16>
    %cst_13 = arith.constant dense<0.000000e+00> : vector<32x32xf32>
    %22 = tpu.matmul %3, %21, %cst_13 {dimension_numbers = #tpu.dot_dimension_numbers<[1], [0], [0], [1], [0, 0, 1, 1], [], []>} : vector<32x16xbf16>, vector<16x32xbf16>, vector<32x32xf32> -> vector<32x32xf32>
    %c0_14 = arith.constant 0 : index
    %c0_15 = arith.constant 0 : index
    %c0_16 = arith.constant 0 : index
    %c0_17 = arith.constant 0 : index
    %23 = vector.load %arg6[%c0_14, %c0_15, %c0_16, %c0_17] : memref<1x8x32x32xf32, #tpu.memory_space<vmem>>, vector<1x1x32x32xf32>
    %24 = vector.shape_cast %23 : vector<1x1x32x32xf32> to vector<32x32xf32>
    %25 = vector.shape_cast %22 : vector<32x32xf32> to vector<1x1x32x32xf32>
    tpu.vector_store %arg6[%c0_14, %c0_15, %c0_16, %c0_17], %25 {strides = array<i32>} : memref<1x8x32x32xf32, #tpu.memory_space<vmem>>, vector<1x1x32x32xf32>,
    %26 = vector.extract_strided_slice %19 {offsets = [0, 1, 0], sizes = [16, 1, 32], strides = [1, 1, 1]} : vector<16x8x32xbf16> to vector<16x1x32xbf16>
    %27 = vector.shape_cast %26 : vector<16x1x32xbf16> to vector<16x32xbf16>
    %cst_18 = arith.constant dense<0.000000e+00> : vector<32x32xf32>
    %28 = tpu.matmul %3, %27, %cst_18 {dimension_numbers = #tpu.dot_dimension_numbers<[1], [0], [0], [1], [0, 0, 1, 1], [], []>} : vector<32x16xbf16>, vector<16x32xbf16>, vector<32x32xf32> -> vector<32x32xf32>
    %c0_19 = arith.constant 0 : index
    %c1 = arith.constant 1 : index
    %c0_20 = arith.constant 0 : index
    %c0_21 = arith.constant 0 : index
    %29 = vector.load %arg6[%c0_19, %c1, %c0_20, %c0_21] : memref<1x8x32x32xf32, #tpu.memory_space<vmem>>, vector<1x1x32x32xf32>
    %30 = vector.shape_cast %29 : vector<1x1x32x32xf32> to vector<32x32xf32>
    %31 = vector.shape_cast %28 : vector<32x32xf32> to vector<1x1x32x32xf32>
    tpu.vector_store %arg6[%c0_19, %c1, %c0_20, %c0_21], %31 {strides = array<i32>} : memref<1x8x32x32xf32, #tpu.memory_space<vmem>>, vector<1x1x32x32xf32>,
    %32 = vector.extract_strided_slice %19 {offsets = [0, 2, 0], sizes = [16, 1, 32], strides = [1, 1, 1]} : vector<16x8x32xbf16> to vector<16x1x32xbf16>
    %33 = vector.shape_cast %32 : vector<16x1x32xbf16> to vector<16x32xbf16>
    %cst_22 = arith.constant dense<0.000000e+00> : vector<32x32xf32>
    %34 = tpu.matmul %3, %33, %cst_22 {dimension_numbers = #tpu.dot_dimension_numbers<[1], [0], [0], [1], [0, 0, 1, 1], [], []>} : vector<32x16xbf16>, vector<16x32xbf16>, vector<32x32xf32> -> vector<32x32xf32>
    %c0_23 = arith.constant 0 : index
    %c2 = arith.constant 2 : index
    %c0_24 = arith.constant 0 : index
    %c0_25 = arith.constant 0 : index
    %35 = vector.load %arg6[%c0_23, %c2, %c0_24, %c0_25] : memref<1x8x32x32xf32, #tpu.memory_space<vmem>>, vector<1x1x32x32xf32>
    %36 = vector.shape_cast %35 : vector<1x1x32x32xf32> to vector<32x32xf32>
    %37 = vector.shape_cast %34 : vector<32x32xf32> to vector<1x1x32x32xf32>
    tpu.vector_store %arg6[%c0_23, %c2, %c0_24, %c0_25], %37 {strides = array<i32>} : memref<1x8x32x32xf32, #tpu.memory_space<vmem>>, vector<1x1x32x32xf32>,
    %38 = vector.extract_strided_slice %19 {offsets = [0, 3, 0], sizes = [16, 1, 32], strides = [1, 1, 1]} : vector<16x8x32xbf16> to vector<16x1x32xbf16>
    %39 = vector.shape_cast %38 : vector<16x1x32xbf16> to vector<16x32xbf16>
    %cst_26 = arith.constant dense<0.000000e+00> : vector<32x32xf32>
    %40 = tpu.matmul %3, %39, %cst_26 {dimension_numbers = #tpu.dot_dimension_numbers<[1], [0], [0], [1], [0, 0, 1, 1], [], []>} : vector<32x16xbf16>, vector<16x32xbf16>, vector<32x32xf32> -> vector<32x32xf32>
    %c0_27 = arith.constant 0 : index
    %c3 = arith.constant 3 : index
    %c0_28 = arith.constant 0 : index
    %c0_29 = arith.constant 0 : index
    %41 = vector.load %arg6[%c0_27, %c3, %c0_28, %c0_29] : memref<1x8x32x32xf32, #tpu.memory_space<vmem>>, vector<1x1x32x32xf32>
    %42 = vector.shape_cast %41 : vector<1x1x32x32xf32> to vector<32x32xf32>
    %43 = vector.shape_cast %40 : vector<32x32xf32> to vector<1x1x32x32xf32>
    tpu.vector_store %arg6[%c0_27, %c3, %c0_28, %c0_29], %43 {strides = array<i32>} : memref<1x8x32x32xf32, #tpu.memory_space<vmem>>, vector<1x1x32x32xf32>,
    %44 = vector.extract_strided_slice %19 {offsets = [0, 4, 0], sizes = [16, 1, 32], strides = [1, 1, 1]} : vector<16x8x32xbf16> to vector<16x1x32xbf16>
    %45 = vector.shape_cast %44 : vector<16x1x32xbf16> to vector<16x32xbf16>
    %cst_30 = arith.constant dense<0.000000e+00> : vector<32x32xf32>
    %46 = tpu.matmul %3, %45, %cst_30 {dimension_numbers = #tpu.dot_dimension_numbers<[1], [0], [0], [1], [0, 0, 1, 1], [], []>} : vector<32x16xbf16>, vector<16x32xbf16>, vector<32x32xf32> -> vector<32x32xf32>
    %c0_31 = arith.constant 0 : index
    %c4 = arith.constant 4 : index
    %c0_32 = arith.constant 0 : index
    %c0_33 = arith.constant 0 : index
    %47 = vector.load %arg6[%c0_31, %c4, %c0_32, %c0_33] : memref<1x8x32x32xf32, #tpu.memory_space<vmem>>, vector<1x1x32x32xf32>
    %48 = vector.shape_cast %47 : vector<1x1x32x32xf32> to vector<32x32xf32>
    %49 = vector.shape_cast %46 : vector<32x32xf32> to vector<1x1x32x32xf32>
    tpu.vector_store %arg6[%c0_31, %c4, %c0_32, %c0_33], %49 {strides = array<i32>} : memref<1x8x32x32xf32, #tpu.memory_space<vmem>>, vector<1x1x32x32xf32>,
    %50 = vector.extract_strided_slice %19 {offsets = [0, 5, 0], sizes = [16, 1, 32], strides = [1, 1, 1]} : vector<16x8x32xbf16> to vector<16x1x32xbf16>
    %51 = vector.shape_cast %50 : vector<16x1x32xbf16> to vector<16x32xbf16>
    %cst_34 = arith.constant dense<0.000000e+00> : vector<32x32xf32>
    %52 = tpu.matmul %3, %51, %cst_34 {dimension_numbers = #tpu.dot_dimension_numbers<[1], [0], [0], [1], [0, 0, 1, 1], [], []>} : vector<32x16xbf16>, vector<16x32xbf16>, vector<32x32xf32> -> vector<32x32xf32>
    %c0_35 = arith.constant 0 : index
    %c5 = arith.constant 5 : index
    %c0_36 = arith.constant 0 : index
    %c0_37 = arith.constant 0 : index
    %53 = vector.load %arg6[%c0_35, %c5, %c0_36, %c0_37] : memref<1x8x32x32xf32, #tpu.memory_space<vmem>>, vector<1x1x32x32xf32>
    %54 = vector.shape_cast %53 : vector<1x1x32x32xf32> to vector<32x32xf32>
    %55 = vector.shape_cast %52 : vector<32x32xf32> to vector<1x1x32x32xf32>
    tpu.vector_store %arg6[%c0_35, %c5, %c0_36, %c0_37], %55 {strides = array<i32>} : memref<1x8x32x32xf32, #tpu.memory_space<vmem>>, vector<1x1x32x32xf32>,
    %56 = vector.extract_strided_slice %19 {offsets = [0, 6, 0], sizes = [16, 1, 32], strides = [1, 1, 1]} : vector<16x8x32xbf16> to vector<16x1x32xbf16>
    %57 = vector.shape_cast %56 : vector<16x1x32xbf16> to vector<16x32xbf16>
    %cst_38 = arith.constant dense<0.000000e+00> : vector<32x32xf32>
    %58 = tpu.matmul %3, %57, %cst_38 {dimension_numbers = #tpu.dot_dimension_numbers<[1], [0], [0], [1], [0, 0, 1, 1], [], []>} : vector<32x16xbf16>, vector<16x32xbf16>, vector<32x32xf32> -> vector<32x32xf32>
    %c0_39 = arith.constant 0 : index
    %c6 = arith.constant 6 : index
    %c0_40 = arith.constant 0 : index
    %c0_41 = arith.constant 0 : index
    %59 = vector.load %arg6[%c0_39, %c6, %c0_40, %c0_41] : memref<1x8x32x32xf32, #tpu.memory_space<vmem>>, vector<1x1x32x32xf32>
    %60 = vector.shape_cast %59 : vector<1x1x32x32xf32> to vector<32x32xf32>
    %61 = vector.shape_cast %58 : vector<32x32xf32> to vector<1x1x32x32xf32>
    tpu.vector_store %arg6[%c0_39, %c6, %c0_40, %c0_41], %61 {strides = array<i32>} : memref<1x8x32x32xf32, #tpu.memory_space<vmem>>, vector<1x1x32x32xf32>,
    %62 = vector.extract_strided_slice %19 {offsets = [0, 7, 0], sizes = [16, 1, 32], strides = [1, 1, 1]} : vector<16x8x32xbf16> to vector<16x1x32xbf16>
    %63 = vector.shape_cast %62 : vector<16x1x32xbf16> to vector<16x32xbf16>
    %cst_42 = arith.constant dense<0.000000e+00> : vector<32x32xf32>
    %64 = tpu.matmul %3, %63, %cst_42 {dimension_numbers = #tpu.dot_dimension_numbers<[1], [0], [0], [1], [0, 0, 1, 1], [], []>} : vector<32x16xbf16>, vector<16x32xbf16>, vector<32x32xf32> -> vector<32x32xf32>
    %c0_43 = arith.constant 0 : index
    %c7 = arith.constant 7 : index
    %c0_44 = arith.constant 0 : index
    %c0_45 = arith.constant 0 : index
    %65 = vector.load %arg6[%c0_43, %c7, %c0_44, %c0_45] : memref<1x8x32x32xf32, #tpu.memory_space<vmem>>, vector<1x1x32x32xf32>
    %66 = vector.shape_cast %65 : vector<1x1x32x32xf32> to vector<32x32xf32>
    %67 = vector.shape_cast %64 : vector<32x32xf32> to vector<1x1x32x32xf32>
    tpu.vector_store %arg6[%c0_43, %c7, %c0_44, %c0_45], %67 {strides = array<i32>} : memref<1x8x32x32xf32, #tpu.memory_space<vmem>>, vector<1x1x32x32xf32>,
    return
  }
  func.func @transform_0(%arg0: i32) -> (i32, i32, i32, i32) {
    %c0_i32 = arith.constant 0 : i32
    %c0_i32_0 = arith.constant 0 : i32
    %c0_i32_1 = arith.constant 0 : i32
    %c0_i32_2 = arith.constant 0 : i32
    return %arg0, %c0_i32, %c0_i32_0, %c0_i32_1 : i32, i32, i32, i32
  }
  func.func @transform_1(%arg0: i32) -> (i32, i32) {
    %c0_i32 = arith.constant 0 : i32
    %c0_i32_0 = arith.constant 0 : i32
    %c0_i32_1 = arith.constant 0 : i32
    return %c0_i32, %c0_i32_0 : i32, i32
  }
  func.func @transform_2(%arg0: i32) -> (i32, i32) {
    %c0_i32 = arith.constant 0 : i32
    %c0_i32_0 = arith.constant 0 : i32
    %c0_i32_1 = arith.constant 0 : i32
    return %c0_i32, %c0_i32_0 : i32, i32
  }
  func.func @transform_3(%arg0: i32) -> (i32, i32) {
    %c0_i32 = arith.constant 0 : i32
    %c0_i32_0 = arith.constant 0 : i32
    %c0_i32_1 = arith.constant 0 : i32
    return %c0_i32, %c0_i32_0 : i32, i32
  }
  func.func @transform_4(%arg0: i32) -> (i32, i32) {
    %c0_i32 = arith.constant 0 : i32
    %c0_i32_0 = arith.constant 0 : i32
    %c0_i32_1 = arith.constant 0 : i32
    return %c0_i32, %c0_i32_0 : i32, i32
  }
  func.func @transform_5(%arg0: i32) -> (i32, i32, i32, i32) {
    %c0_i32 = arith.constant 0 : i32
    %c0_i32_0 = arith.constant 0 : i32
    %c0_i32_1 = arith.constant 0 : i32
    %c0_i32_2 = arith.constant 0 : i32
    return %arg0, %c0_i32, %c0_i32_0, %c0_i32_1 : i32, i32, i32, i32
  }
}

</mosaic_0001>

<bundles_post_ra>
// kernel: tpu_custom_call.1
= control target key start
LH: loop header
LB: loop body
LE: loop exit
PB: predicated region body
PF: predicated region fallthrough
CT: control target
= control target key end

     0   :  { %10 = vsyncpa [#allocation3], 0  ;;  %s3281_s0 = inlined_call_operand.hbm [shape: bf16[2,16,4,16], index: 0, kind: input, shape index: {}]   ;;  %s3282_s1 = inlined_call_operand.vmem [shape: bf16[8,4], index: 1, kind: input, shape index: {}]   ;;  %s3283_s2 = inlined_call_operand.vmem [shape: f32[8,1], index: 2, kind: input, shape index: {}]   ;;  %s3284_s3 = inlined_call_operand.vmem [shape: bf16[16,32], index: 3, kind: input, shape index: {}]   ;;  %s3285_s4 = inlined_call_operand.vmem [shape: bf16[32,16], index: 4, kind: input, shape index: {}]   ;;  %s3286_s5 = inlined_call_operand.hbm [shape: f32[2,8,32,32], index: 5, kind: output, shape index: {}]  }
   0x1   :  { %12 = vsyncpa [#allocation3 + $0x1], 0 }
   0x2   :  { %13 = vsyncpa [#allocation4], 0 }
   0x3   :  { %15 = vsyncpa [#allocation4 + $0x1], 0  ;;  %s2564_s18 = smov 0   ;;  %s2566_s19 = smov 0  }
   0x4   :  { %s2568_s20 = smov 0   ;;  %s2570_s21 = smov 0  }
   0x5 LB: > { %s2585_s22 = sadd.s32 4294967295, %s2523_s21   ;;  %s2012_s23 = sadd.s32 4294967294, %s2523_s21   ;;  %s2523_s21 = sphi %s2570_s21, %s3301_s21   ;;  %s2519_s20 = sphi %s2568_s20, %s3300_s20   ;;  %s2515_s19 = sphi %s2566_s19, %s3299_s19   ;;  %s2511_s18 = sphi %s2564_s18, %s3298_s18  }
   0x6   : > { %s2589_s24 = sadd.s32 1, %s2523_s21   ;;  %s28_s25 = sadd.s32 1, %s2519_s20 }
   0x7   : > { %s25_s26 = ssub.s32 %s2523_s21, %s2589_s24  ;;  %p35_p0 = scmp.ne.s32.totalorder %s2519_s20, %s2515_s19 }
   0x8   : > { %p26_p1 = scmp.eq.s32.totalorder %s25_s26, 0  ;;  %p36_p2 = scmp.eq.s32.totalorder %s2523_s21, 0 }
   0x9   : > { %p41_p3 = scmp.ne.s32.totalorder %s2515_s19, %s2511_s18  ;;  %p42_p4 = scmp.eq.s32.totalorder %s2585_s22, 0 }
   0xa   : > { %s2601_s27 = scalar_select %p26_p1, %s2519_s20, %s28_s25  }
   0xb   : > { %p2603_p5 = por %p36_p2, %p35_p0  ;;  %p2607_p6 = por %p42_p4, %p41_p3 }
   0xc   : > { %p149_p7 = scmp.eq.s32.totalorder %s2585_s22, 1  ;;  %p155_p8 = scmp.eq.s32.totalorder %s2012_s23, 1 }
   0xd   : > { %s3290_s29 = scalar_select %p2607_p6, 1, 0 }
   0xe   : > { %p2386_p10 = scmp.lt.s32.totalorder %s2523_s21, 2  ;;  %p2614_p11 = por %p149_p7, %p35_p0 }
   0xf   : > { %p2618_p12 = por %p155_p8, %p41_p3  ;;  %s187_s7 = sand.u32 1, %s2519_s20  }
  0x10   : > { %s3291_s30 = scalar_select %p2614_p11, 1, 0 }
  0x11   : > { %s3292_s6 = scalar_select %p2618_p12, 1, 0 }
  0x12   : > { %s2121_s8 = sshll.u32 %s2523_s21, 9  ;;  %s2015_s9 = sshll.u32 %s187_s7, 5 }
  0x13   : > { %s2627_s12 = scalar_lea.hbm %s3281_s0, %s2121_s8  ;;  %s191_s13 = scalar_lea.vmem [#allocation2], %s2015_s9 }
  0x14   : > { %s198_s14 = sshll.u32 %s191_s13, 4  ;;  %p2631_p13 = pnand %p2386_p10, %p2603_p5  ;;  %s2635_s14 = int_to_ptr.vmem [resolvable:$true] %s198_s14 }
  0x15   : > { %s2637_s16 = scalar_lea.sflag [#allocation3], %s187_s7  ;;  %s2431_s17 = scalar_lea.hbm %s2627_s12, 512 }
  0x16   : > { %p2432_p0 = scmp.ne.s32.totalorder %s2627_s12, %s2431_s17  ;;  %p2433_p1 = pneg %p2631_p13 }
  0x17   : > { %s2436_s26 = scalar_lea.hbm %s3281_s0, 1024  ;;  %p2437_p4 = scmp.lt.s32.totalorder %s2627_s12, %s3281_s0 }
  0x18   : > { %p2434_p2 = pnand %p2433_p1, %p2432_p0  ;;  %p2438_p5 = scmp.lt.s32.totalorder %s2436_s26, %s2431_s17 }
  0x1a   : > { %p2435_p3 = pneg %p2434_p2  ;;  %p2439_p7 = por %p2438_p5, %p2437_p4 }
  0x1c   : > { %p2440_p8 = pnand %p2439_p7, %p2435_p3 }
  0x1e   : > { %2443 = shalt.err (!%p2440_p8)
}
  0x1f   : > { %s2444_s7 = scalar_lea.vmem %s2635_s14, 512  ;;  %s2525_s9 = smov [#allocation2]  }
  0x20   : > { %p2445_p10 = scmp.ne.s32.totalorder %s2635_s14, %s2444_s7  ;;  %s2449_s10 = sshll.u32 %s2525_s9, 4  ;;  %s2450_s10 = int_to_ptr.vmem [resolvable:$false] %s2449_s10 }
  0x21   : > { %s2451_s11 = scalar_lea.vmem %s2450_s10, 1024  ;;  %p2452_p2 = scmp.lt.s32.totalorder %s2635_s14, %s2450_s10 }
  0x22   : > { %p2447_p9 = pnand %p2445_p10, %p2433_p1  ;;  %p2453_p12 = scmp.lt.s32.totalorder %s2451_s11, %s2444_s7 }
  0x24   : > { %p2448_p0 = pneg %p2447_p9  ;;  %p2454_p11 = por %p2453_p12, %p2452_p2 }
  0x26   : > { %p2455_p6 = pnand %p2454_p11, %p2448_p0 }
  0x28   : > { %2458 = shalt.err (!%p2455_p6)
}
  0x29   : > { %s2526_s13 = smov 32   ;;  %s2527_s17 = smov 2  }
  0x2a   : > { %2381 = dma.hbm_to_vmem [thread:$0]  (!%p2631_p13), %s2627_s12, 512, %s2635_s14, %s2637_s16, %s2526_s13, %s2526_s13, %s2527_s17  }
  0x2b   : > { %p2018_p9 = scmp.ge.s32.totalorder %s2523_s21, 1  ;;  %p206_p1 = scmp.lt.s32.totalorder %s2523_s21, 3 }
  0x2d   : > { %p207_p3 = pnand %p2018_p9, %p206_p1 }
  0x2e   : > { %s2661_s23 = sand.u32 (!%p207_p3), 1, %s2515_s19   ;;  %p3294_p6 = scmp.ne.s32.totalorder (!%p207_p3), %s3290_s29, 0 }
  0x2f   : > { %210 = sbr.rel (%p207_p3) target bundleno = 782 (0x30e), region = 40  ;;  %s2019_s25 = sshll.u32 (!%p207_p3), %s2661_s23, 5 }
  0x30   : > { %s213_s26 = scalar_lea.sflag (!%p207_p3), [#allocation3], %s2661_s23  ;;  %s2665_s28 = scalar_lea.vmem (!%p207_p3), [#allocation2], %s2019_s25 }
  0x34   : > { %2502 = dma.done.wait (%p3294_p6), %s213_s26, 512  }
  0x35   : > { %2504 = vsyncadd (%p3294_p6), %s213_s26, 4294966784  ;;  %v2528_v0 = vmov 0.0   ;;  %vm2529_vm0 = vmmov 0   ;;  %v2530_v1 = vmov 0   ;;  %vm277_vm1 = vcmask 1041408   ;;  %v245_v13 = vld [vmem:[%s3283_s2] sm:$0xff] }
  0x36   : > { %2212 = vmatprep.subr.bf16.mxu0 %v2528_v0  ;;  %2218 = vmatprep.subr.bf16.mxu1 %v2528_v0  ;;  %v252_v2 = vld [vmem:[%s2665_s28] sm:$0x3]  ;;  %v253_v3 = vld [vmem:[%s2665_s28 + $0x2] sm:$0x3]  ;;  %v254_v6 = vld [vmem:[%s2665_s28 + $0x4] sm:$0x3] }
  0x37   : > { %2214 = vmatprep.mubr.msk.bf16.mxu0 %vm2529_vm0, %v2528_v0  ;;  %2220 = vmatprep.mubr.msk.bf16.mxu1 %vm2529_vm0, %v2528_v0  ;;  %v279_v4 = vsel %vm277_vm1, %v252_v2, 0  ;;  %v322_v5 = vsel %vm277_vm1, %v253_v3, 0  ;;  %v255_v7 = vld [vmem:[%s2665_s28 + $0x6] sm:$0x3]  ;;  %v2686_v8 = vld [vmem:[%s3282_s1] sm:$0xf] }
  0x38   : > { %2427 = vset.pattern.permute.xlu0 %v2530_v1  ;;  %2213 = vmatpush3.bf16.msra.mxu0 %v279_v4  ;;  %vm273_vm2 = vcmask 31744   ;;  %v365_v9 = vsel %vm277_vm1, %v254_v6, 0  ;;  %v408_v10 = vsel %vm277_vm1, %v255_v7, 0  ;;  %v256_v11 = vld [vmem:[%s2665_s28 + $0x8] sm:$0x3]  ;;  %v2428_v36 = vld [vmem:[%s3284_s3] sm:$0xff]  }
  0x39   : > { %2219 = vmatpush3.bf16.msra.mxu1 %v322_v5  ;;  %2224 = vmatprep.subr.bf16.mxu0 %v2528_v0  ;;  %v257_v12 = vld [vmem:[%s2665_s28 + $0xa] sm:$0x3]  ;;  %v451_v14 = vsel %vm277_vm1, %v256_v11, 0  ;;  %v258_v16 = vld [vmem:[%s2665_s28 + $0xc] sm:$0x3]  ;;  %vm1044_vm3 = vcmask 130048  }
  0x3a   : > { %2230 = vmatprep.subr.bf16.mxu1 %v2528_v0  ;;  %270 = vperm.xlu0 %2427, %v245_v13   ;;  %v494_v15 = vsel %vm277_vm1, %v257_v12, 0  ;;  %v259_v17 = vld [vmem:[%s2665_s28 + $0xe] sm:$0x3]  ;;  %v537_v18 = vsel %vm277_vm1, %v258_v16, 0  ;;  %v260_v20 = vld [vmem:[%s2665_s28 + $0x10] sm:$0x3] }
  0x3b   : > { %2215 = vmatmul.mubr.msk.bf16.vlgmr.msra.gmra.mxu0 %vm273_vm2, %v2686_v8  ;;  %v580_v19 = vsel %vm277_vm1, %v259_v17, 0  ;;  %v261_v21 = vld [vmem:[%s2665_s28 + $0x12] sm:$0x3]  ;;  %v623_v22 = vsel %vm277_vm1, %v260_v20, 0  ;;  %v262_v24 = vld [vmem:[%s2665_s28 + $0x14] sm:$0x3] }
  0x3c   : > { %2221 = vmatmul.mubr.msk.bf16.vlgmr.msra.gmra.mxu1 %vm273_vm2, %v2686_v8  ;;  %2225 = vmatpush3.bf16.msra.mxu0 %v365_v9  ;;  %v666_v23 = vsel %vm277_vm1, %v261_v21, 0  ;;  %v263_v25 = vld [vmem:[%s2665_s28 + $0x16] sm:$0x3]  ;;  %v709_v26 = vsel %vm277_vm1, %v262_v24, 0  ;;  %v264_v28 = vld [vmem:[%s2665_s28 + $0x18] sm:$0x3] }
  0x3d   : > { %2231 = vmatpush3.bf16.msra.mxu1 %v408_v10  ;;  %2226 = vmatprep.mubr.msk.bf16.mxu0 %vm2529_vm0, %v2528_v0  ;;  %v752_v27 = vsel %vm277_vm1, %v263_v25, 0  ;;  %v265_v29 = vld [vmem:[%s2665_s28 + $0x1a] sm:$0x3]  ;;  %v795_v30 = vsel %vm277_vm1, %v264_v28, 0  ;;  %v266_v32 = vld [vmem:[%s2665_s28 + $0x1c] sm:$0x3] }
  0x3e   : > { %2232 = vmatprep.mubr.msk.bf16.mxu1 %vm2529_vm0, %v2528_v0  ;;  %2236 = vmatprep.subr.bf16.mxu0 %v2528_v0  ;;  %v838_v31 = vsel %vm277_vm1, %v265_v29, 0  ;;  %v267_v33 = vld [vmem:[%s2665_s28 + $0x1e] sm:$0x3]  ;;  %v881_v34 = vsel %vm277_vm1, %v266_v32, 0  ;;  %vm1241_vm4 = vcmask 1041409   ;;  %vm1244_vm5 = vcmask 1042434  }
  0x3f   : > { %2242 = vmatprep.subr.bf16.mxu1 %v2528_v0  ;;  %v924_v35 = vsel %vm277_vm1, %v267_v33, 0  ;;  %vm1247_vm6 = vcmask 1043459   ;;  %vm1250_vm7 = vcmask 1044484   ;;  %vm1253_vm8 = vcmask 1045509   ;;  %s2020_s13 = sshll.u32 %s2661_s23, 8  ;;  %s2146_s25 = sshll.u32 %s2585_s22, 12 }
  0x40   : > { %vm1256_vm9 = vcmask 1046534   ;;  %vm1259_vm10 = vcmask 1047559   ;;  %vm1332_vm11 = vcmask 261120   ;;  %s3165_s17 = scalar_lea.vmem [#allocation5], %s2020_s13  ;;  %s3232_s12 = scalar_lea.hbm %s3286_s5, %s2146_s25 }
  0x41   : > { %s1939_s26 = sshll.u32 %s3165_s17, 4  ;;  %s1926_s22 = scalar_lea.sflag [#allocation4], %s2661_s23  ;;  %s3234_s26 = int_to_ptr.vmem [resolvable:$true] %s1939_s26 }
  0x42   : > { %s2459_s14 = scalar_lea.vmem %s3234_s26, 4096  ;;  %p3295_p12 = scmp.ne.s32.totalorder %s3291_s30, 0 }
  0x43   : > { %2227 = vmatmul.mubr.msk.bf16.vlgmr.msra.gmra.mxu0 %vm273_vm2, %v2686_v8  ;;  %p2460_p11 = scmp.ne.s32.totalorder %s3234_s26, %s2459_s14  ;;  %s2531_s15 = smov [#allocation5]  }
  0x44   : > { %2233 = vmatmul.mubr.msk.bf16.vlgmr.msra.gmra.mxu1 %vm273_vm2, %v2686_v8  ;;  %2237 = vmatpush3.bf16.msra.mxu0 %v451_v14  ;;  %s2463_s16 = sshll.u32 %s2531_s15, 4  ;;  %s2464_s16 = int_to_ptr.vmem [resolvable:$false] %s2463_s16 }
  0x45   : > { %2243 = vmatpush3.bf16.msra.mxu1 %v494_v15  ;;  %2238 = vmatprep.mubr.msk.bf16.mxu0 %vm2529_vm0, %v2528_v0  ;;  %p2461_p13 = pnand %p2460_p11, %p3295_p12  ;;  %s2465_s8 = scalar_lea.vmem %s2464_s16, 8192 }
  0x46   : > { %2244 = vmatprep.mubr.msk.bf16.mxu1 %vm2529_vm0, %v2528_v0  ;;  %2248 = vmatprep.subr.bf16.mxu0 %v2528_v0  ;;  %p2466_p5 = scmp.lt.s32.totalorder %s3234_s26, %s2464_s16  ;;  %p2467_p7 = scmp.lt.s32.totalorder %s2465_s8, %s2459_s14 }
  0x47   : > { %2254 = vmatprep.subr.bf16.mxu1 %v2528_v0  ;;  %p2462_p4 = pneg %p2461_p13 }
  0x48   : > { %p2468_p8 = por %p2467_p7, %p2466_p5 }
  0x4a   : > { %p2469_p10 = pnand %p2468_p8, %p2462_p4 }
  0x4b   : > { %2239 = vmatmul.mubr.msk.bf16.vlgmr.msra.gmra.mxu0 %vm273_vm2, %v2686_v8 }
  0x4c   : > { %2245 = vmatmul.mubr.msk.bf16.vlgmr.msra.gmra.mxu1 %vm273_vm2, %v2686_v8  ;;  %2249 = vmatpush3.bf16.msra.mxu0 %v537_v18 }
  0x4d   : > { %2255 = vmatpush3.bf16.msra.mxu1 %v580_v19  ;;  %2250 = vmatprep.mubr.msk.bf16.mxu0 %vm2529_vm0, %v2528_v0 }
  0x4e   : > { %2256 = vmatprep.mubr.msk.bf16.mxu1 %vm2529_vm0, %v2528_v0  ;;  %2260 = vmatprep.subr.bf16.mxu0 %v2528_v0 }
  0x4f   : > { %2266 = vmatprep.subr.bf16.mxu1 %v2528_v0 }
  0x53   : > { %2251 = vmatmul.mubr.msk.bf16.vlgmr.msra.gmra.mxu0 %vm273_vm2, %v2686_v8 }
  0x54   : > { %2257 = vmatmul.mubr.msk.bf16.vlgmr.msra.gmra.mxu1 %vm273_vm2, %v2686_v8  ;;  %2261 = vmatpush3.bf16.msra.mxu0 %v623_v22 }
  0x55   : > { %2267 = vmatpush3.bf16.msra.mxu1 %v666_v23  ;;  %2262 = vmatprep.mubr.msk.bf16.mxu0 %vm2529_vm0, %v2528_v0 }
  0x56   : > { %2268 = vmatprep.mubr.msk.bf16.mxu1 %vm2529_vm0, %v2528_v0  ;;  %2272 = vmatprep.subr.bf16.mxu0 %v2528_v0 }
  0x57   : > { %2278 = vmatprep.subr.bf16.mxu1 %v2528_v0 }
  0x5b   : > { %2263 = vmatmul.mubr.msk.bf16.vlgmr.msra.gmra.mxu0 %vm273_vm2, %v2686_v8 }
  0x5c   : > { %2269 = vmatmul.mubr.msk.bf16.vlgmr.msra.gmra.mxu1 %vm273_vm2, %v2686_v8  ;;  %2273 = vmatpush3.bf16.msra.mxu0 %v709_v26 }
  0x5d   : > { %2279 = vmatpush3.bf16.msra.mxu1 %v752_v27  ;;  %2274 = vmatprep.mubr.msk.bf16.mxu0 %vm2529_vm0, %v2528_v0 }
  0x5e   : > { %2280 = vmatprep.mubr.msk.bf16.mxu1 %vm2529_vm0, %v2528_v0  ;;  %2284 = vmatprep.subr.bf16.mxu0 %v2528_v0 }
  0x5f   : > { %2290 = vmatprep.subr.bf16.mxu1 %v2528_v0 }
  0x63   : > { %2275 = vmatmul.mubr.msk.bf16.vlgmr.msra.gmra.mxu0 %vm273_vm2, %v2686_v8 }
  0x64   : > { %2281 = vmatmul.mubr.msk.bf16.vlgmr.msra.gmra.mxu1 %vm273_vm2, %v2686_v8  ;;  %2285 = vmatpush3.bf16.msra.mxu0 %v795_v30 }
  0x65   : > { %2291 = vmatpush3.bf16.msra.mxu1 %v838_v31  ;;  %2286 = vmatprep.mubr.msk.bf16.mxu0 %vm2529_vm0, %v2528_v0 }
  0x66   : > { %2292 = vmatprep.mubr.msk.bf16.mxu1 %vm2529_vm0, %v2528_v0  ;;  %2296 = vmatprep.subr.bf16.mxu0 %v2528_v0 }
  0x67   : > { %2302 = vmatprep.subr.bf16.mxu1 %v2528_v0 }
  0x6b   : > { %2287 = vmatmul.mubr.msk.bf16.vlgmr.msra.gmra.mxu0 %vm273_vm2, %v2686_v8 }
  0x6c   : > { %2293 = vmatmul.mubr.msk.bf16.vlgmr.msra.gmra.mxu1 %vm273_vm2, %v2686_v8  ;;  %2297 = vmatpush3.bf16.msra.mxu0 %v881_v34 }
  0x6d   : > { %2303 = vmatpush3.bf16.msra.mxu1 %v924_v35  ;;  %2298 = vmatprep.mubr.msk.bf16.mxu0 %vm2529_vm0, %v2528_v0 }
  0x6e   : > { %2304 = vmatprep.mubr.msk.bf16.mxu1 %vm2529_vm0, %v2528_v0  ;;  %2308 = vmatprep.subr.bf16.mxu0 %v2428_v36 }
  0x73   : > { %2299 = vmatmul.mubr.msk.bf16.vlgmr.msra.gmra.mxu0 %vm273_vm2, %v2686_v8 }
  0x74   : > { %2305 = vmatmul.mubr.msk.bf16.vlgmr.msra.gmra.mxu1 %vm273_vm2, %v2686_v8  ;;  %2309 = vmatpush3.bf16.msra.mxu0 %v2428_v36 }
  0xb5   : > { %v2794_v37 = vpop.permute.xlu0 %270 }
  0xfb   : > { %v315_v38 = vpop.f32.mrf.mxu0 }
  0xfc   : > { %v358_v39 = vpop.f32.mrf.mxu1  ;;  %v316_v40 = vadd.f32 %v315_v38, %v2794_v37 }
  0xfd   : > { %v359_v41 = vadd.f32 %v358_v39, %v2794_v37  ;;  %v2216_v42 = vpop.f32.mrf.mxu0 }
  0xfe   : > { %v2222_v43 = vpop.f32.mrf.mxu1  ;;  %v966_v44 = vmax.f32 %v316_v40, 0.0 }
  0xff   : > { %v967_v45 = vmax.f32 %v359_v41, 0.0  ;;  %v318_v46 = vpop.f32.mrf.mxu0 }
 0x100   : > { %v361_v47 = vpop.f32.mrf.mxu1 }
 0x101   : > { %v2122_v48 = vpack.c.bf16 %v967_v45, %v966_v44  ;;  %v2217_v49 = vpop.f32.mrf.mxu0 }
 0x102   : > { %v2223_v50 = vpop.f32.mrf.mxu1 }
 0x103   : > { %2310 = vmatprep.mubr.msk.bf16.mxu0 %vm1044_vm3, %v2122_v48  ;;  %v401_v51 = vpop.f32.mrf.mxu0 }
 0x104   : > { %v444_v52 = vpop.f32.mrf.mxu1  ;;  %v402_v53 = vadd.f32 %v401_v51, %v2794_v37 }
 0x105   : > { %v445_v54 = vadd.f32 %v444_v52, %v2794_v37  ;;  %v2228_v55 = vpop.f32.mrf.mxu0 }
 0x106   : > { %v2234_v56 = vpop.f32.mrf.mxu1  ;;  %v968_v57 = vmax.f32 %v402_v53, 0.0 }
 0x107   : > { %v969_v58 = vmax.f32 %v445_v54, 0.0  ;;  %v404_v59 = vpop.f32.mrf.mxu0 }
 0x108   : > { %v447_v60 = vpop.f32.mrf.mxu1 }
 0x109   : > { %v2123_v61 = vpack.c.bf16 %v969_v58, %v968_v57  ;;  %v2229_v62 = vpop.f32.mrf.mxu0 }
 0x10a   : > { %v2235_v63 = vpop.f32.mrf.mxu1 }
 0x10b   : > { %2311 = vmatmul.mubr.msk.bf16.vlgmr.msra.gmra.mxu0 %vm1044_vm3, %v2123_v61  ;;  %v487_v0 = vpop.f32.mrf.mxu0 }
 0x10c   : > { %v530_v1 = vpop.f32.mrf.mxu1  ;;  %v488_v2 = vadd.f32 %v487_v0, %v2794_v37 }
 0x10d   : > { %v531_v3 = vadd.f32 %v530_v1, %v2794_v37  ;;  %v2240_v4 = vpop.f32.mrf.mxu0 }
 0x10e   : > { %v2246_v5 = vpop.f32.mrf.mxu1  ;;  %v970_v6 = vmax.f32 %v488_v2, 0.0 }
 0x10f   : > { %v971_v7 = vmax.f32 %v531_v3, 0.0  ;;  %v490_v8 = vpop.f32.mrf.mxu0 }
 0x110   : > { %v533_v9 = vpop.f32.mrf.mxu1 }
 0x111   : > { %v2124_v10 = vpack.c.bf16 %v971_v7, %v970_v6  ;;  %v2241_v11 = vpop.f32.mrf.mxu0 }
 0x112   : > { %v2247_v12 = vpop.f32.mrf.mxu1 }
 0x113   : > { %2314 = vmatprep.mubr.msk.bf16.mxu0 %vm1044_vm3, %v2124_v10  ;;  %v573_v13 = vpop.f32.mrf.mxu0 }
 0x114   : > { %v616_v14 = vpop.f32.mrf.mxu1  ;;  %v574_v15 = vadd.f32 %v573_v13, %v2794_v37 }
 0x115   : > { %v617_v16 = vadd.f32 %v616_v14, %v2794_v37  ;;  %v2252_v17 = vpop.f32.mrf.mxu0 }
 0x116   : > { %v2258_v18 = vpop.f32.mrf.mxu1  ;;  %v972_v19 = vmax.f32 %v574_v15, 0.0  ;;  %v2823_v15 = vld [vmem:[%s3285_s4] sm:$0xff]  }
 0x117   : > { %v973_v20 = vmax.f32 %v617_v16, 0.0  ;;  %v576_v21 = vpop.f32.mrf.mxu0  ;;  %2328 = vmatprep.mubr.msk.bf16.mxu1 %vm1044_vm3, %v2823_v15 }
 0x118   : > { %v619_v22 = vpop.f32.mrf.mxu1 }
 0x119   : > { %v2125_v23 = vpack.c.bf16 %v973_v20, %v972_v19  ;;  %v2253_v24 = vpop.f32.mrf.mxu0 }
 0x11a   : > { %v2259_v25 = vpop.f32.mrf.mxu1 }
 0x11b   : > { %2315 = vmatmul.mubr.msk.bf16.gmra.mxu0 %vm1044_vm3, %v2125_v23  ;;  %v659_v26 = vpop.f32.mrf.mxu0 }
 0x11c   : > { %v702_v27 = vpop.f32.mrf.mxu1  ;;  %v660_v28 = vadd.f32 %v659_v26, %v2794_v37 }
 0x11d   : > { %v703_v29 = vadd.f32 %v702_v27, %v2794_v37  ;;  %v2264_v30 = vpop.f32.mrf.mxu0 }
 0x11e   : > { %v2270_v31 = vpop.f32.mrf.mxu1  ;;  %v974_v32 = vmax.f32 %v660_v28, 0.0 }
 0x11f   : > { %v975_v33 = vmax.f32 %v703_v29, 0.0  ;;  %v662_v34 = vpop.f32.mrf.mxu0 }
 0x120   : > { %v705_v35 = vpop.f32.mrf.mxu1 }
 0x121   : > { %v2126_v36 = vpack.c.bf16 %v975_v33, %v974_v32  ;;  %v2265_v38 = vpop.f32.mrf.mxu0 }
 0x122   : > { %v2271_v39 = vpop.f32.mrf.mxu1 }
 0x123   : > { %2318 = vmatprep.mubr.msk.bf16.mxu0 %vm1044_vm3, %v2126_v36  ;;  %v745_v40 = vpop.f32.mrf.mxu0 }
 0x124   : > { %v788_v41 = vpop.f32.mrf.mxu1  ;;  %v746_v42 = vadd.f32 %v745_v40, %v2794_v37 }
 0x125   : > { %v789_v43 = vadd.f32 %v788_v41, %v2794_v37  ;;  %v2276_v44 = vpop.f32.mrf.mxu0 }
 0x126   : > { %v2282_v45 = vpop.f32.mrf.mxu1  ;;  %v976_v46 = vmax.f32 %v746_v42, 0.0 }
 0x127   : > { %v977_v47 = vmax.f32 %v789_v43, 0.0  ;;  %v748_v48 = vpop.f32.mrf.mxu0 }
 0x128   : > { %v791_v49 = vpop.f32.mrf.mxu1 }
 0x129   : > { %v2127_v50 = vpack.c.bf16 %v977_v47, %v976_v46  ;;  %v2277_v51 = vpop.f32.mrf.mxu0 }
 0x12a   : > { %v2283_v52 = vpop.f32.mrf.mxu1 }
 0x12b   : > { %2319 = vmatmul.mubr.msk.bf16.gmra.mxu0 %vm1044_vm3, %v2127_v50  ;;  %v831_v53 = vpop.f32.mrf.mxu0 }
 0x12c   : > { %v874_v54 = vpop.f32.mrf.mxu1  ;;  %v832_v55 = vadd.f32 %v831_v53, %v2794_v37 }
 0x12d   : > { %v875_v56 = vadd.f32 %v874_v54, %v2794_v37  ;;  %v2288_v57 = vpop.f32.mrf.mxu0 }
 0x12e   : > { %v2294_v58 = vpop.f32.mrf.mxu1  ;;  %v978_v59 = vmax.f32 %v832_v55, 0.0 }
 0x12f   : > { %v979_v60 = vmax.f32 %v875_v56, 0.0  ;;  %v834_v61 = vpop.f32.mrf.mxu0 }
 0x130   : > { %v877_v62 = vpop.f32.mrf.mxu1 }
 0x131   : > { %v2128_v63 = vpack.c.bf16 %v979_v60, %v978_v59  ;;  %v2289_v0 = vpop.f32.mrf.mxu0 }
 0x132   : > { %v2295_v1 = vpop.f32.mrf.mxu1 }
 0x133   : > { %2322 = vmatprep.mubr.msk.bf16.mxu0 %vm1044_vm3, %v2128_v63  ;;  %v917_v2 = vpop.f32.mrf.mxu0 }
 0x134   : > { %v960_v3 = vpop.f32.mrf.mxu1  ;;  %v918_v4 = vadd.f32 %v917_v2, %v2794_v37 }
 0x135   : > { %v961_v5 = vadd.f32 %v960_v3, %v2794_v37  ;;  %v2300_v6 = vpop.f32.mrf.mxu0 }
 0x136   : > { %v2306_v7 = vpop.f32.mrf.mxu1  ;;  %v980_v8 = vmax.f32 %v918_v4, 0.0 }
 0x137   : > { %v981_v9 = vmax.f32 %v961_v5, 0.0  ;;  %v920_v10 = vpop.f32.mrf.mxu0 }
 0x138   : > { %v963_v11 = vpop.f32.mrf.mxu1 }
 0x139   : > { %v2129_v12 = vpack.c.bf16 %v981_v9, %v980_v8  ;;  %v2301_v13 = vpop.f32.mrf.mxu0 }
 0x13a   : > { %v2307_v14 = vpop.f32.mrf.mxu1 }
 0x13b   : > { %2323 = vmatmul.mubr.msk.bf16.gmra.mxu0 %vm1044_vm3, %v2129_v12 }
 0x13c   : > { %2352 = vmatprep.mubr.msk.bf16.mxu0 %vm1044_vm3, %v2823_v15 }
 0x1cb   : > { %v2312_v37 = vpop.f32.mrf.mxu0 }
 0x1cc   : > { %v2132_v19 = vpack.c.bf16 %v2312_v37, %v2312_v37 }
 0x1cd   : > { %v1103_v16 = vpop.f32.mrf.mxu0 }
 0x1ce   : > { %v2130_v21 = vpack.c.bf16 %v1103_v16, %v1103_v16  ;;  %v2829_v23 = vunpack.c.l.b16 %v2132_v19 }
 0x1cf   : > { %v2313_v17 = vpop.f32.mrf.mxu0 }
 0x1d0   : > { %v2833_v26 = vunpack.c.l.b16 %v2130_v21  ;;  %v2133_v27 = vpack.c.bf16 %v2313_v17, %v2313_v17  ;;  %v1243_v30 = vrot.slane %v2829_v23, 6  ;;  %v1592_v31 = vrot.slane %v2829_v23, 2 }
 0x1d1   : > { %v1106_v18 = vpop.f32.mrf.mxu0  ;;  %v1339_v32 = vrot.slane %v2829_v23, 7  ;;  %v1760_v36 = vrot.slane %v2829_v23, 4  ;;  %v1508_v42 = vrot.slane %v2829_v23, 1 }
 0x1d2   : > { %v2131_v20 = vpack.c.bf16 %v1106_v18, %v1106_v18  ;;  %v2845_v39 = vunpack.c.l.b16 %v2133_v27  ;;  %v1337_v41 = vrot.slane %v2833_v26, 1  ;;  %v1589_v44 = vrot.slane %v2833_v26, 4 }
 0x1d3   : > { %v1757_v45 = vrot.slane %v2833_v26, 6  ;;  %v1421_v46 = vrot.slane %v2833_v26, 2  ;;  %v1505_v49 = vrot.slane %v2833_v26, 3  ;;  %v1673_v58 = vrot.slane %v2833_v26, 5 }
 0x1d4   : > { %v2831_v24 = vunpack.c.l.b16 %v2131_v20  ;;  %v1246_v56 = vrot.slane %v2845_v39, 5  ;;  %v1594_v57 = vrot.slane %v2845_v39, 1  ;;  %v1341_v62 = vrot.slane %v2845_v39, 6 }
 0x1d5   : > { %v1762_v1 = vrot.slane %v2845_v39, 3  ;;  %v1425_v4 = vrot.slane %v2845_v39, 7 }
 0x1d6   : > { %v1240_v29 = vrot.slane %v2831_v24, 7  ;;  %v1590_v34 = vrot.slane %v2831_v24, 3  ;;  %v1758_v35 = vrot.slane %v2831_v24, 5  ;;  %v1422_v38 = vrot.slane %v2831_v24, 1 }
 0x1d7   : > { %v1338_v48 = vsel %vm1241_vm4, %v2831_v24, %v1337_v41  ;;  %v1506_v50 = vrot.slane %v2831_v24, 2  ;;  %v1674_v6 = vrot.slane %v2831_v24, 4 }
 0x1d8   : > { %v1242_v47 = vsel %vm1241_vm4, %v1240_v29, %v2833_v26  ;;  %v1591_v52 = vsel %vm1241_vm4, %v1590_v34, %v1589_v44  ;;  %v1759_v53 = vsel %vm1241_vm4, %v1758_v35, %v1757_v45  ;;  %v1423_v54 = vsel %vm1241_vm4, %v1422_v38, %v1421_v46 }
 0x1d9   : > { %v1245_v60 = vsel %vm1244_vm5, %v1243_v30, %v1242_v47  ;;  %v1340_v61 = vsel %vm1244_vm5, %v1339_v32, %v1338_v48  ;;  %v1593_v63 = vsel %vm1244_vm5, %v1592_v31, %v1591_v52  ;;  %v1761_v0 = vsel %vm1244_vm5, %v1760_v36, %v1759_v53 }
 0x1da   : > { %v1424_v2 = vsel %vm1244_vm5, %v2829_v23, %v1423_v54  ;;  %v1507_v5 = vsel %vm1241_vm4, %v1506_v50, %v1505_v49  ;;  %v1248_v8 = vsel %vm1247_vm6, %v1246_v56, %v1245_v60  ;;  %v1342_v10 = vsel %vm1247_vm6, %v1341_v62, %v1340_v61 }
 0x1db   : > { %v2316_v22 = vpop.f32.mrf.mxu0  ;;  %v1595_v13 = vsel %vm1247_vm6, %v1594_v57, %v1593_v63  ;;  %v1763_v14 = vsel %vm1247_vm6, %v1762_v1, %v1761_v0  ;;  %v1426_v37 = vsel %vm1247_vm6, %v1425_v4, %v1424_v2  ;;  %v2894_v19 = vsel %vm1244_vm5, %v1508_v42, %v1507_v5 }
 0x1dc   : > { %v2136_v51 = vpack.c.bf16 %v2316_v22, %v2316_v22 }
 0x1dd   : > { %v1119_v25 = vpop.f32.mrf.mxu0 }
 0x1de   : > { %v2134_v40 = vpack.c.bf16 %v1119_v25, %v1119_v25  ;;  %v2876_v3 = vunpack.c.l.b16 %v2136_v51 }
 0x1df   : > { %v2835_v28 = vpop.f32.mrf.mxu0 }
 0x1e0   : > { %v2861_v55 = vunpack.c.l.b16 %v2134_v40  ;;  %v2137_v7 = vpack.c.bf16 %v2835_v28, %v2835_v28  ;;  %v1255_v21 = vrot.slane %v2876_v3, 2  ;;  %v1599_v22 = vrot.slane %v2876_v3, 6 }
 0x1e1   : > { %v1122_v33 = vpop.f32.mrf.mxu0  ;;  %v1347_v30 = vrot.slane %v2876_v3, 3  ;;  %v1431_v31 = vrot.slane %v2876_v3, 4 }
 0x1e2   : > { %v2135_v43 = vpack.c.bf16 %v1122_v33, %v1122_v33  ;;  %v1249_v9 = vrot.slane %v2861_v55, 4  ;;  %v1343_v17 = vrot.slane %v2861_v55, 5  ;;  %v1764_v18 = vrot.slane %v2861_v55, 2 }
 0x1e3   : > { %v2900_v28 = vunpack.c.l.b16 %v2137_v7  ;;  %v1596_v35 = vsel %vm1250_vm7, %v2861_v55, %v1595_v13  ;;  %v1427_v36 = vrot.slane %v2861_v55, 6  ;;  %v1511_v42 = vrot.slane %v2861_v55, 7 }
 0x1e4   : > { %v2866_v59 = vunpack.c.l.b16 %v2135_v43  ;;  %v1251_v29 = vsel %vm1250_vm7, %v1249_v9, %v1248_v8  ;;  %v1344_v40 = vsel %vm1250_vm7, %v1343_v17, %v1342_v10  ;;  %v1765_v41 = vsel %vm1250_vm7, %v1764_v18, %v1763_v14 }
 0x1e5   : > { %v1258_v50 = vrot.slane %v2900_v28, 1  ;;  %v1601_v51 = vrot.slane %v2900_v28, 5  ;;  %v1349_v54 = vrot.slane %v2900_v28, 2  ;;  %v1428_v56 = vsel %vm1250_vm7, %v1427_v36, %v1426_v37 }
 0x1e6   : > { %v1252_v12 = vrot.slane %v2866_v59, 3  ;;  %v1597_v16 = vrot.slane %v2866_v59, 7  ;;  %v1345_v25 = vrot.slane %v2866_v59, 4  ;;  %v1766_v27 = vrot.slane %v2866_v59, 1 }
 0x1e7   : > { %v1429_v47 = vrot.slane %v2866_v59, 5  ;;  %v1769_v1 = vrot.slane %v2900_v28, 7 }
 0x1e8   : > { %v1254_v34 = vsel %vm1253_vm8, %v1252_v12, %v1251_v29  ;;  %v1598_v38 = vsel %vm1253_vm8, %v1597_v16, %v1596_v35  ;;  %v1346_v45 = vsel %vm1253_vm8, %v1345_v25, %v1344_v40  ;;  %v1767_v46 = vsel %vm1253_vm8, %v1766_v27, %v1765_v41 }
 0x1e9   : > { %v1257_v49 = vsel %vm1256_vm9, %v1255_v21, %v1254_v34  ;;  %v1600_v53 = vsel %vm1256_vm9, %v1599_v22, %v1598_v38  ;;  %v1348_v61 = vsel %vm1256_vm9, %v1347_v30, %v1346_v45  ;;  %v1768_v62 = vsel %vm1256_vm9, %v2876_v3, %v1767_v46 }
 0x1ea   : > { %v2932_v0 = vsel %vm1259_vm10, %v1258_v50, %v1257_v49  ;;  %v1430_v2 = vsel %vm1253_vm8, %v1429_v47, %v1428_v56  ;;  %v2938_v5 = vsel %vm1259_vm10, %v1601_v51, %v1600_v53  ;;  %v2943_v9 = vsel %vm1259_vm10, %v1349_v54, %v1348_v61 }
 0x1eb   : > { %v2320_v11 = vpop.f32.mrf.mxu0  ;;  %v2955_v16 = vsel %vm1256_vm9, %v1431_v31, %v1430_v2 }
 0x1ec   : > { %v2140_v43 = vpack.c.bf16 %v2320_v11, %v2320_v11  ;;  %v2947_v11 = vsel %vm1259_vm10, %v1769_v1, %v1768_v62 }
 0x1ed   : > { %v1135_v20 = vpop.f32.mrf.mxu0 }
 0x1ee   : > { %v2138_v32 = vpack.c.bf16 %v1135_v20, %v1135_v20  ;;  %v2929_v63 = vunpack.c.l.b16 %v2140_v43 }
 0x1ef   : > { %v2321_v33 = vpop.f32.mrf.mxu0 }
 0x1f0   : > { %v2919_v52 = vunpack.c.l.b16 %v2138_v32  ;;  %v2141_v57 = vpack.c.bf16 %v2321_v33, %v2321_v33  ;;  %v1263_v17 = vrot.slane %v2929_v63, 6  ;;  %v1606_v18 = vrot.slane %v2929_v63, 2 }
 0x1f1   : > { %v1138_v44 = vpop.f32.mrf.mxu0  ;;  %v1353_v31 = vrot.slane %v2929_v63, 7  ;;  %v1774_v32 = vrot.slane %v2929_v63, 4  ;;  %v1522_v34 = vrot.slane %v2929_v63, 1 }
 0x1f2   : > { %v2139_v48 = vpack.c.bf16 %v1138_v44, %v1138_v44  ;;  %v1351_v10 = vrot.slane %v2919_v52, 1  ;;  %v2950_v13 = vunpack.c.l.b16 %v2141_v57  ;;  %v1603_v14 = vrot.slane %v2919_v52, 4 }
 0x1f3   : > { %v1771_v37 = vrot.slane %v2919_v52, 6  ;;  %v1435_v21 = vrot.slane %v2919_v52, 2  ;;  %v1519_v40 = vrot.slane %v2919_v52, 3 }
 0x1f4   : > { %v2924_v60 = vunpack.c.l.b16 %v2139_v48  ;;  %v1265_v36 = vrot.slane %v2950_v13, 5  ;;  %v1355_v38 = vrot.slane %v2950_v13, 6  ;;  %v1608_v53 = vrot.slane %v2950_v13, 1 }
 0x1f5   : > { %v1776_v54 = vrot.slane %v2950_v13, 3  ;;  %v1439_v56 = vrot.slane %v2950_v13, 7 }
 0x1f6   : > { %v1261_v4 = vrot.slane %v2924_v60, 7  ;;  %v1604_v7 = vrot.slane %v2924_v60, 3  ;;  %v1772_v8 = vrot.slane %v2924_v60, 5  ;;  %v1436_v12 = vrot.slane %v2924_v60, 1 }
 0x1f7   : > { %v1352_v20 = vsel %vm1241_vm4, %v2924_v60, %v1351_v10  ;;  %v1520_v29 = vrot.slane %v2924_v60, 2  ;;  %v1688_v57 = vrot.slane %v2924_v60, 4 }
 0x1f8   : > { %v1262_v22 = vsel %vm1241_vm4, %v1261_v4, %v2919_v52  ;;  %v1605_v25 = vsel %vm1241_vm4, %v1604_v7, %v1603_v14  ;;  %v1773_v27 = vsel %vm1241_vm4, %v1772_v8, %v1771_v37  ;;  %v1437_v33 = vsel %vm1241_vm4, %v1436_v12, %v1435_v21 }
 0x1f9   : > { %v1264_v43 = vsel %vm1244_vm5, %v1263_v17, %v1262_v22  ;;  %v1607_v44 = vsel %vm1244_vm5, %v1606_v18, %v1605_v25  ;;  %v1354_v45 = vsel %vm1244_vm5, %v1353_v31, %v1352_v20  ;;  %v1775_v46 = vsel %vm1244_vm5, %v1774_v32, %v1773_v27 }
 0x1fa   : > { %v1438_v49 = vsel %vm1244_vm5, %v2929_v63, %v1437_v33  ;;  %v1521_v50 = vsel %vm1241_vm4, %v1520_v29, %v1519_v40  ;;  %v1266_v1 = vsel %vm1247_vm6, %v1265_v36, %v1264_v43  ;;  %v1356_v2 = vsel %vm1247_vm6, %v1355_v38, %v1354_v45 }
 0x1fb   : > { %v2324_v30 = vpop.f32.mrf.mxu0  ;;  %v1609_v7 = vsel %vm1247_vm6, %v1608_v53, %v1607_v44  ;;  %v1777_v8 = vsel %vm1247_vm6, %v1776_v54, %v1775_v46  ;;  %v1440_v10 = vsel %vm1247_vm6, %v1439_v56, %v1438_v49  ;;  %v1523_v12 = vsel %vm1244_vm5, %v1522_v34, %v1521_v50 }
 0x1fc   : > { %v2144_v35 = vpack.c.bf16 %v2324_v30, %v2324_v30 }
 0x1fd   : > { %v1151_v41 = vpop.f32.mrf.mxu0 }
 0x1fe   : > { %v2978_v47 = vunpack.c.l.b16 %v2144_v35  ;;  %v2142_v48 = vpack.c.bf16 %v1151_v41, %v1151_v41 }
 0x1ff   : > { %v2325_v51 = vpop.f32.mrf.mxu0 }
 0x200   : > { %v2987_v61 = vunpack.c.l.b16 %v2142_v48  ;;  %v2145_v62 = vpack.c.bf16 %v2325_v51, %v2325_v51  ;;  %v1271_v18 = vrot.slane %v2978_v47, 2  ;;  %v1613_v20 = vrot.slane %v2978_v47, 6 }
 0x201   : > { %v1154_v4 = vpop.f32.mrf.mxu0  ;;  %v1361_v22 = vrot.slane %v2978_v47, 3  ;;  %v1445_v31 = vrot.slane %v2978_v47, 4 }
 0x202   : > { %v2995_v14 = vunpack.c.l.b16 %v2145_v62  ;;  %v2143_v37 = vpack.c.bf16 %v1154_v4, %v1154_v4  ;;  %v1267_v17 = vrot.slane %v2987_v61, 4  ;;  %v1357_v21 = vrot.slane %v2987_v61, 5 }
 0x203   : > { %v1778_v25 = vrot.slane %v2987_v61, 2  ;;  %v1610_v29 = vsel %vm1250_vm7, %v2987_v61, %v1609_v7  ;;  %v1441_v30 = vrot.slane %v2987_v61, 6 }
 0x204   : > { %v3003_v27 = vunpack.c.l.b16 %v2143_v37  ;;  %v1268_v32 = vsel %vm1250_vm7, %v1267_v17, %v1266_v1  ;;  %v1273_v33 = vrot.slane %v2995_v14, 1  ;;  %v1615_v34 = vrot.slane %v2995_v14, 5 }
 0x205   : > { %v1358_v35 = vsel %vm1250_vm7, %v1357_v21, %v1356_v2  ;;  %v1363_v43 = vrot.slane %v2995_v14, 2  ;;  %v1779_v44 = vsel %vm1250_vm7, %v1778_v25, %v1777_v8  ;;  %v1783_v45 = vrot.slane %v2995_v14, 7 }
 0x206   : > { %v1269_v36 = vrot.slane %v3003_v27, 3  ;;  %v1611_v38 = vrot.slane %v3003_v27, 7  ;;  %v1359_v40 = vrot.slane %v3003_v27, 4  ;;  %v1780_v41 = vrot.slane %v3003_v27, 1 }
 0x207   : > { %v1443_v46 = vrot.slane %v3003_v27, 5  ;;  %v1442_v17 = vsel %vm1250_vm7, %v1441_v30, %v1440_v10  ;;  %v1447_v21 = vrot.slane %v2995_v14, 3  ;;  %v1687_v25 = vrot.slane %v2919_v52, 5 }
 0x208   : > { %v1270_v48 = vsel %vm1253_vm8, %v1269_v36, %v1268_v32  ;;  %v1612_v49 = vsel %vm1253_vm8, %v1611_v38, %v1610_v29  ;;  %v1360_v50 = vsel %vm1253_vm8, %v1359_v40, %v1358_v35  ;;  %v1781_v51 = vsel %vm1253_vm8, %v1780_v41, %v1779_v44 }
 0x209   : > { %v1272_v53 = vsel %vm1256_vm9, %v1271_v18, %v1270_v48  ;;  %v1614_v54 = vsel %vm1256_vm9, %v1613_v20, %v1612_v49  ;;  %v1362_v56 = vsel %vm1256_vm9, %v1361_v22, %v1360_v50  ;;  %v1782_v62 = vsel %vm1256_vm9, %v2978_v47, %v1781_v51 }
 0x20a   : > { %v1274_v1 = vsel %vm1259_vm10, %v1273_v33, %v1272_v53  ;;  %v1616_v2 = vsel %vm1259_vm10, %v1615_v34, %v1614_v54  ;;  %v1364_v4 = vsel %vm1259_vm10, %v1363_v43, %v1362_v56  ;;  %v1784_v7 = vsel %vm1259_vm10, %v1783_v45, %v1782_v62 }
 0x20b   : > { %v1275_v8 = vpack.c.b16 %v1274_v1, %v2932_v0  ;;  %v1617_v37 = vpack.c.b16 %v1616_v2, %v2938_v5  ;;  %v1525_v18 = vrot.slane %v2987_v61, 7  ;;  %v1444_v20 = vsel %vm1253_vm8, %v1443_v46, %v1442_v17  ;;  %v3047_v5 = vld [vmem:[%s3285_s4 + $0x8] sm:$0xff]  }
 0x20c   : > { %v1527_v22 = vrot.slane %v3003_v27, 6  ;;  %v1365_v29 = vpack.c.b16 %v1364_v4, %v2943_v9  ;;  %v1785_v0 = vpack.c.b16 %v1784_v7, %v2947_v11  ;;  %v1433_v10 = vrot.slane %v2900_v28, 3 }
 0x20d   : > { %2326 = vmatprep.subr.bf16.mxu1 %v1275_v8  ;;  %2350 = vmatprep.subr.bf16.mxu0 %v1617_v37  ;;  %v1446_v30 = vsel %vm1256_vm9, %v1445_v31, %v1444_v20  ;;  %v1513_v33 = vrot.slane %v2866_v59, 6  ;;  %v1524_v9 = vsel %vm1247_vm6, %v2950_v13, %v1523_v12  ;;  %v1689_v11 = vsel %vm1241_vm4, %v1688_v57, %v1687_v25 }
 0x20e   : > { %2327 = vmatpush3.bf16.msra.mxu1 %v1275_v8  ;;  %2351 = vmatpush3.bf16.msra.mxu0 %v1617_v37  ;;  %v1448_v32 = vsel %vm1259_vm10, %v1447_v21, %v1446_v30  ;;  %v1510_v34 = vsel %vm1247_vm6, %v2845_v39, %v2894_v19  ;;  %v1526_v31 = vsel %vm1250_vm7, %v1525_v18, %v1524_v9  ;;  %v1676_v35 = vrot.slane %v2829_v23, 3 }
 0x20f   : > { %2332 = vmatprep.subr.bf16.mxu1 %v1365_v29  ;;  %2362 = vmatprep.subr.bf16.mxu0 %v1785_v0  ;;  %v1690_v36 = vrot.slane %v2929_v63, 3  ;;  %v1434_v38 = vsel %vm1259_vm10, %v1433_v10, %v2955_v16  ;;  %v1512_v12 = vsel %vm1250_vm7, %v1511_v42, %v1510_v34  ;;  %v1528_v57 = vsel %vm1253_vm8, %v1527_v22, %v1526_v31 }
 0x210   : > { %v1675_v19 = vsel %vm1241_vm4, %v1674_v6, %v1673_v58  ;;  %v1449_v40 = vpack.c.b16 %v1448_v32, %v1434_v38  ;;  %v1529_v16 = vrot.slane %v2978_v47, 5  ;;  %v1694_v42 = vrot.slane %v2987_v61, 1 }
 0x211   : > { %2329 = vmatmul.mubr.msk.bf16.vlgmr.msra.gmra.mxu1 %vm1044_vm3, %v3047_v5  ;;  %2353 = vmatmul.mubr.msk.bf16.vlgmr.msra.gmra.mxu0 %vm1044_vm3, %v3047_v5  ;;  %v1691_v41 = vsel %vm1244_vm5, %v1690_v36, %v1689_v11  ;;  %v1514_v43 = vsel %vm1253_vm8, %v1513_v33, %v1512_v12  ;;  %v1692_v44 = vrot.slane %v2950_v13, 2  ;;  %v1515_v58 = vrot.slane %v2876_v3, 5 }
 0x212   : > { %2333 = vmatpush3.bf16.msra.mxu1 %v1365_v29  ;;  %2363 = vmatpush3.bf16.msra.mxu0 %v1785_v0  ;;  %v1530_v6 = vsel %vm1256_vm9, %v1529_v16, %v1528_v57  ;;  %v1677_v45 = vsel %vm1244_vm5, %v1676_v35, %v1675_v19  ;;  %v1680_v46 = vrot.slane %v2861_v55, 1  ;;  %v1531_v48 = vrot.slane %v2995_v14, 4 }
 0x213   : > { %2338 = vmatprep.subr.bf16.mxu1 %v1449_v40  ;;  %2334 = vmatprep.mubr.msk.bf16.mxu1 %vm1044_vm3, %v2823_v15  ;;  %v1678_v49 = vrot.slane %v2845_v39, 2  ;;  %v1693_v50 = vsel %vm1247_vm6, %v1692_v44, %v1691_v41  ;;  %v1856_v51 = vrot.slane %v2924_v60, 6  ;;  %v1516_v53 = vsel %vm1256_vm9, %v1515_v58, %v1514_v43 }
 0x214   : > { %2364 = vmatprep.mubr.msk.bf16.mxu0 %vm1044_vm3, %v2823_v15  ;;  %v1695_v54 = vsel %vm1250_vm7, %v1694_v42, %v1693_v50  ;;  %v1842_v56 = vrot.slane %v2831_v24, 6  ;;  %v1517_v62 = vrot.slane %v2900_v28, 4  ;;  %v1532_v1 = vsel %vm1259_vm10, %v1531_v48, %v1530_v6 }
 0x215   : > { %v1679_v2 = vsel %vm1247_vm6, %v1678_v49, %v1677_v45  ;;  %v1855_v4 = vrot.slane %v2919_v52, 7  ;;  %v1696_v8 = vsel %vm1253_vm8, %v3003_v27, %v1695_v54  ;;  %v1841_v37 = vrot.slane %v2833_v26, 7 }
 0x216   : > { %v1681_v7 = vsel %vm1250_vm7, %v1680_v46, %v1679_v2  ;;  %v1518_v60 = vsel %vm1259_vm10, %v1517_v62, %v1516_v53  ;;  %v1697_v18 = vrot.slane %v2978_v47, 7  ;;  %v1858_v20 = vrot.slane %v2929_v63, 5 }
 0x217   : > { %v1857_v17 = vsel %vm1241_vm4, %v1856_v51, %v1855_v4  ;;  %v1533_v24 = vpack.c.b16 %v1532_v1, %v1518_v60  ;;  %v1682_v26 = vsel %vm1253_vm8, %v2866_v59, %v1681_v7  ;;  %v1843_v52 = vsel %vm1241_vm4, %v1842_v56, %v1841_v37 }
 0x218   : > { %v1844_v21 = vrot.slane %v2829_v23, 5  ;;  %v1683_v22 = vrot.slane %v2876_v3, 7  ;;  %v1698_v25 = vsel %vm1256_vm9, %v1697_v18, %v1696_v8  ;;  %v1859_v63 = vsel %vm1244_vm5, %v1858_v20, %v1857_v17 }
 0x219   : > { %2335 = vmatmul.mubr.msk.bf16.vlgmr.msra.gmra.mxu1 %vm1044_vm3, %v3047_v5  ;;  %2365 = vmatmul.mubr.msk.bf16.vlgmr.msra.gmra.mxu0 %vm1044_vm3, %v3047_v5  ;;  %v1862_v29 = vrot.slane %v2987_v61, 3  ;;  %v1699_v0 = vrot.slane %v2995_v14, 6  ;;  %v1860_v10 = vrot.slane %v2950_v13, 4  ;;  %v1864_v30 = vrot.slane %v3003_v27, 2 }
 0x21a   : > { %2339 = vmatpush3.bf16.msra.mxu1 %v1449_v40  ;;  %2340 = vmatprep.mubr.msk.bf16.mxu1 %vm1044_vm3, %v2823_v15  ;;  %v1684_v32 = vsel %vm1256_vm9, %v1683_v22, %v1682_v26  ;;  %v1845_v33 = vsel %vm1244_vm5, %v1844_v21, %v1843_v52  ;;  %v1846_v23 = vrot.slane %v2845_v39, 4  ;;  %v1848_v9 = vrot.slane %v2861_v55, 3 }
 0x21b   : > { %2344 = vmatprep.subr.bf16.mxu1 %v1533_v24  ;;  %v1685_v11 = vrot.slane %v2900_v28, 6  ;;  %v1700_v34 = vsel %vm1259_vm10, %v1699_v0, %v1698_v25  ;;  %v1850_v61 = vrot.slane %v2866_v59, 2  ;;  %v1861_v31 = vsel %vm1247_vm6, %v1860_v10, %v1859_v63 }
 0x21c   : > { %v1863_v13 = vsel %vm1250_vm7, %v1862_v29, %v1861_v31  ;;  %v1847_v35 = vsel %vm1247_vm6, %v1846_v23, %v1845_v33  ;;  %v1866_v38 = vrot.slane %v2978_v47, 1  ;;  %v1852_v12 = vrot.slane %v2876_v3, 1 }
 0x21d   : > { %v1686_v27 = vsel %vm1259_vm10, %v1685_v11, %v1684_v32  ;;  %v1865_v36 = vsel %vm1253_vm8, %v1864_v30, %v1863_v13  ;;  %v1849_v55 = vsel %vm1250_vm7, %v1848_v9, %v1847_v35 }
 0x21e   : > { %v1701_v39 = vpack.c.b16 %v1700_v34, %v1686_v27  ;;  %v1851_v59 = vsel %vm1253_vm8, %v1850_v61, %v1849_v55  ;;  %v1867_v57 = vsel %vm1256_vm9, %v1866_v38, %v1865_v36 }
 0x21f   : > { %v1853_v19 = vsel %vm1256_vm9, %v1852_v12, %v1851_v59  ;;  %v1868_v40 = vsel %vm1259_vm10, %v2995_v14, %v1867_v57 }
 0x220   : > { %v1854_v47 = vsel %vm1259_vm10, %v2900_v28, %v1853_v19 }
 0x221   : > { %2341 = vmatmul.mubr.msk.bf16.vlgmr.msra.gmra.mxu1 %vm1044_vm3, %v3047_v5  ;;  %v1869_v16 = vpack.c.b16 %v1868_v40, %v1854_v47 }
 0x222   : > { %2345 = vmatpush3.bf16.msra.mxu1 %v1533_v24  ;;  %2346 = vmatprep.mubr.msk.bf16.mxu1 %vm1044_vm3, %v2823_v15 }
 0x223   : > { %2356 = vmatprep.subr.bf16.mxu1 %v1701_v39 }
 0x229   : > { %2347 = vmatmul.mubr.msk.bf16.vlgmr.msra.gmra.mxu1 %vm1044_vm3, %v3047_v5 }
 0x22a   : > { %2357 = vmatpush3.bf16.msra.mxu1 %v1701_v39  ;;  %2358 = vmatprep.mubr.msk.bf16.mxu1 %vm1044_vm3, %v2823_v15 }
 0x22b   : > { %2368 = vmatprep.subr.bf16.mxu1 %v1869_v16 }
 0x231   : > { %2359 = vmatmul.mubr.msk.bf16.vlgmr.msra.gmra.mxu1 %vm1044_vm3, %v3047_v5 }
 0x232   : > { %2369 = vmatpush3.bf16.msra.mxu1 %v1869_v16  ;;  %2370 = vmatprep.mubr.msk.bf16.mxu1 %vm1044_vm3, %v2823_v15 }
 0x239   : > { %2371 = vmatmul.mubr.msk.bf16.vlgmr.msra.gmra.mxu1 %vm1044_vm3, %v3047_v5 }
 0x2d1   : > { %v2330_v3 = vpop.f32.mrf.mxu1  ;;  %v2354_v28 = vpop.f32.mrf.mxu0 }
 0x2d2   : > { %1335 = vst.msk [vmem:[%s3165_s17 + $0x10] sm:$0xff] %vm1332_vm11, %v2330_v3  ;;  %2096 = vst.msk [vmem:[%s3165_s17 + $0x90] sm:$0xff] %vm1332_vm11, %v2354_v28 }
 0x2d3   : > { %v1317_v15 = vpop.f32.mrf.mxu1  ;;  %v1653_v14 = vpop.f32.mrf.mxu0 }
 0x2d4   : > { %1333 = vst.msk [vmem:[%s3165_s17] sm:$0xff] %vm1332_vm11, %v1317_v15  ;;  %2094 = vst.msk [vmem:[%s3165_s17 + $0x80] sm:$0xff] %vm1332_vm11, %v1653_v14 }
 0x2d5   : > { %v2331_v5 = vpop.f32.mrf.mxu1  ;;  %v2355_v41 = vpop.f32.mrf.mxu0 }
 0x2d6   : > { %1336 = vst.msk [vmem:[%s3165_s17 + $0x18] sm:$0xff] %vm1332_vm11, %v2331_v5  ;;  %2097 = vst.msk [vmem:[%s3165_s17 + $0x98] sm:$0xff] %vm1332_vm11, %v2355_v41 }
 0x2d7   : > { %v1320_v42 = vpop.f32.mrf.mxu1  ;;  %v1656_v43 = vpop.f32.mrf.mxu0 }
 0x2d8   : > { %1334 = vst.msk [vmem:[%s3165_s17 + $0x8] sm:$0xff] %vm1332_vm11, %v1320_v42  ;;  %2095 = vst.msk [vmem:[%s3165_s17 + $0x88] sm:$0xff] %vm1332_vm11, %v1656_v43 }
 0x2d9   : > { %v2336_v44 = vpop.f32.mrf.mxu1  ;;  %v2366_v58 = vpop.f32.mrf.mxu0 }
 0x2da   : > { %2078 = vst.msk [vmem:[%s3165_s17 + $0x30] sm:$0xff] %vm1332_vm11, %v2336_v44  ;;  %2108 = vst.msk [vmem:[%s3165_s17 + $0xd0] sm:$0xff] %vm1332_vm11, %v2366_v58 }
 0x2db   : > { %v1401_v6 = vpop.f32.mrf.mxu1  ;;  %v1821_v45 = vpop.f32.mrf.mxu0 }
 0x2dc   : > { %2076 = vst.msk [vmem:[%s3165_s17 + $0x20] sm:$0xff] %vm1332_vm11, %v1401_v6  ;;  %2106 = vst.msk [vmem:[%s3165_s17 + $0xc0] sm:$0xff] %vm1332_vm11, %v1821_v45 }
 0x2dd   : > { %v2337_v46 = vpop.f32.mrf.mxu1  ;;  %v2367_v48 = vpop.f32.mrf.mxu0 }
 0x2de   : > { %2079 = vst.msk [vmem:[%s3165_s17 + $0x38] sm:$0xff] %vm1332_vm11, %v2337_v46  ;;  %2109 = vst.msk [vmem:[%s3165_s17 + $0xd8] sm:$0xff] %vm1332_vm11, %v2367_v48 }
 0x2df   : > { %v1404_v49 = vpop.f32.mrf.mxu1  ;;  %v1824_v50 = vpop.f32.mrf.mxu0 }
 0x2e0   : > { %2077 = vst.msk [vmem:[%s3165_s17 + $0x28] sm:$0xff] %vm1332_vm11, %v1404_v49  ;;  %2107 = vst.msk [vmem:[%s3165_s17 + $0xc8] sm:$0xff] %vm1332_vm11, %v1824_v50 }
 0x2e1   : > { %v2342_v51 = vpop.f32.mrf.mxu1 }
 0x2e2   : > { %2084 = vst.msk [vmem:[%s3165_s17 + $0x50] sm:$0xff] %vm1332_vm11, %v2342_v51 }
 0x2e3   : > { %v1485_v53 = vpop.f32.mrf.mxu1 }
 0x2e4   : > { %2082 = vst.msk [vmem:[%s3165_s17 + $0x40] sm:$0xff] %vm1332_vm11, %v1485_v53 }
 0x2e5   : > { %v2343_v54 = vpop.f32.mrf.mxu1 }
 0x2e6   : > { %2085 = vst.msk [vmem:[%s3165_s17 + $0x58] sm:$0xff] %vm1332_vm11, %v2343_v54 }
 0x2e7   : > { %v1488_v56 = vpop.f32.mrf.mxu1 }
 0x2e8   : > { %2083 = vst.msk [vmem:[%s3165_s17 + $0x48] sm:$0xff] %vm1332_vm11, %v1488_v56 }
 0x2e9   : > { %v2348_v62 = vpop.f32.mrf.mxu1 }
 0x2ea   : > { %2090 = vst.msk [vmem:[%s3165_s17 + $0x70] sm:$0xff] %vm1332_vm11, %v2348_v62 }
 0x2eb   : > { %v1569_v1 = vpop.f32.mrf.mxu1 }
 0x2ec   : > { %2088 = vst.msk [vmem:[%s3165_s17 + $0x60] sm:$0xff] %vm1332_vm11, %v1569_v1 }
 0x2ed   : > { %v2349_v2 = vpop.f32.mrf.mxu1 }
 0x2ee   : > { %2091 = vst.msk [vmem:[%s3165_s17 + $0x78] sm:$0xff] %vm1332_vm11, %v2349_v2 }
 0x2ef   : > { %v1572_v4 = vpop.f32.mrf.mxu1 }
 0x2f0   : > { %2089 = vst.msk [vmem:[%s3165_s17 + $0x68] sm:$0xff] %vm1332_vm11, %v1572_v4 }
 0x2f1   : > { %v2360_v7 = vpop.f32.mrf.mxu1 }
 0x2f2   : > { %2102 = vst.msk [vmem:[%s3165_s17 + $0xb0] sm:$0xff] %vm1332_vm11, %v2360_v7 }
 0x2f3   : > { %v1737_v60 = vpop.f32.mrf.mxu1 }
 0x2f4   : > { %2100 = vst.msk [vmem:[%s3165_s17 + $0xa0] sm:$0xff] %vm1332_vm11, %v1737_v60 }
 0x2f5   : > { %v2361_v8 = vpop.f32.mrf.mxu1 }
 0x2f6   : > { %2103 = vst.msk [vmem:[%s3165_s17 + $0xb8] sm:$0xff] %vm1332_vm11, %v2361_v8 }
 0x2f7   : > { %v1740_v37 = vpop.f32.mrf.mxu1 }
 0x2f8   : > { %2101 = vst.msk [vmem:[%s3165_s17 + $0xa8] sm:$0xff] %vm1332_vm11, %v1740_v37 }
 0x2f9   : > { %v2372_v17 = vpop.f32.mrf.mxu1 }
 0x2fa   : > { %2114 = vst.msk [vmem:[%s3165_s17 + $0xf0] sm:$0xff] %vm1332_vm11, %v2372_v17 }
 0x2fb   : > { %v1905_v24 = vpop.f32.mrf.mxu1 }
 0x2fc   : > { %2112 = vst.msk [vmem:[%s3165_s17 + $0xe0] sm:$0xff] %vm1332_vm11, %v1905_v24 }
 0x2fd   : > { %v2373_v18 = vpop.f32.mrf.mxu1 }
 0x2fe   : > { %2115 = vst.msk [vmem:[%s3165_s17 + $0xf8] sm:$0xff] %vm1332_vm11, %v2373_v18 }
 0x2ff   : > { %v1908_v20 = vpop.f32.mrf.mxu1 }
 0x300   : > { %2113 = vst.msk [vmem:[%s3165_s17 + $0xe8] sm:$0xff] %vm1332_vm11, %v1908_v20 }
 0x301   : > { %2472 = shalt.err (!%p2469_p10)
}
 0x302   : > { %s2473_s7 = scalar_lea.hbm %s3232_s12, 4096  ;;  %s2477_s11 = scalar_lea.hbm %s3286_s5, 8192 }
 0x303   : > { %p2474_p0 = scmp.ne.s32.totalorder %s3232_s12, %s2473_s7  ;;  %p2478_p1 = scmp.lt.s32.totalorder %s3232_s12, %s3286_s5 }
 0x304   : > { %p2479_p3 = scmp.lt.s32.totalorder %s2477_s11, %s2473_s7 }
 0x305   : > { %p2475_p2 = pnand %p2474_p0, %p3295_p12 }
 0x306   : > { %p2480_p6 = por %p2479_p3, %p2478_p1 }
 0x307   : > { %p2476_p9 = pneg %p2475_p2 }
 0x309   : > { %p2481_p11 = pnand %p2480_p6, %p2476_p9 }
 0x30b   : > { %2484 = shalt.err (!%p2481_p11)
}
 0x30c   : > { %s2532_s25 = smov 128   ;;  %s2533_s28 = smov 8  }
 0x30d   : > { %2376 = dma.vmem_to_hbm [thread:$0]  (%p3295_p12), %s3234_s26, 4096, %s3232_s12, %s1926_s22, %s2532_s25, %s2532_s25, %s2533_s28  }
 0x30e PF: > { %s1954_s29 = sand.u32 1, %s2511_s18   ;;  %p3296_p13 = scmp.ne.s32.totalorder %s3292_s6, 0 }
 0x30f   : > { %p3297_p4 = scmp.ge.s32.totalorder %s2523_s21, 2  ;;  %s1955_s14 = scalar_lea.sflag [#allocation4], %s1954_s29 }
 0x311   : > { %p2383_p5 = pnand %p3297_p4, %p3296_p13 }
 0x313   : > { %p2384_p7 = pneg %p2383_p5 }
 0x315   : > { %2506 = dma.done.wait (%p2384_p7), %s1955_s14, 4096  }
 0x316   : > { %2508 = vsyncadd (%p2384_p7), %s1955_s14, 4294963200  ;;  %p18_p8 = scmp.ge.s32.totalorder %s2589_s24, 4   ;;  %s3298_s18 = smov %s2515_s19 }
 0x317   : > { %s3299_s19 = smov %s2519_s20  ;;  %s3300_s20 = smov %s2601_s27 }
 0x318   : > { %s3301_s21 = smov %s2589_s24  ;;  %20 = sbr.rel (!%p18_p8) target bundleno = 5 (0x5), region = 92 }
 0x31d   :  { %1960 = vsyncpa [#allocation3], 1 }
 0x31e   :  { %1962 = vsyncpa [#allocation3 + $0x1], 1 }
 0x31f   :  { %1963 = vsyncpa [#allocation4], 1 }
 0x320   :  { %1965 = vsyncpa [#allocation4 + $0x1], 1 }

</bundles_post_ra>
